<compile_context>
chip_gen: v7x
topology: tpu7x:2x2x1
jax: 0.10.0
libtpu: 0.0.40
codegen_flags: <defaults>
</compile_context>

<pallas_src>
from functools import partial

import jax
import jax.numpy as jnp
from jax import lax
from jax.experimental import pallas as pl
from jax.experimental.pallas import tpu as pltpu


def _shaw_kernel(q_ref, r_ref, o_ref, *, scale, ti, n):
    """One grid step: ti sequence positions, all batch*heads.

    q_ref: (BH, ti, d)   queries for positions [i0, i0+ti)
    r_ref: (2n, d)       folded relative table, R[k] = E[clamp(n-1-k,-L,L)+L]
    o_ref: (BH, ti, n)   pos_attn[:, i0:i0+ti, :]
    """
    bi = pl.program_id(0)
    wlen = n + ti                       # R window needed by this block
    ws = n - ti * (bi + 1)              # window start (multiple of ti)
    if ti % 8 == 0:
        ws = pl.multiple_of(ws, 8)      # sublane-aligned dynamic slice
    rwin = r_ref[pl.ds(ws, wlen), :]    # (n+ti, d)

    q_blk = q_ref[...]                  # (BH, ti, d)
    bh, _, d = q_blk.shape
    q2 = q_blk.reshape(bh * ti, d)

    # (bh*ti, d) x (n+ti, d) contracted on d -> (bh*ti, n+ti); f32 accumulate.
    s = lax.dot_general(q2, rwin, (((1,), (1,)), ((), ())),
                        preferred_element_type=jnp.float32)
    s = s.reshape(bh, ti, wlen)

    # Toeplitz shear: row t (global position i0+t) needs columns
    # [ti-1-t, ti-1-t+n).  Static lane slices, assembled into one slab so the
    # output is a single contiguous store (one vst slot on v5e).
    rows = [s[:, t:t + 1, ti - 1 - t: ti - 1 - t + n] for t in range(ti)]
    out = jnp.concatenate(rows, axis=1)          # (BH, ti, n)
    o_ref[...] = (out * scale).astype(o_ref.dtype)


def shaw_relative_positional_embedding(q, k, rel_pos_emb_table, max_seq_len,
                                       *, block_i=None):
    """q, k: (b, h, n, d).  k is unused (matches the PyTorch forward)."""
    del k
    b, h, n, d = q.shape
    bh = b * h
    scale = float(d) ** -0.5

    # --- choose the i-block size (multiple of 8 dividing n; else one block) ---
    if block_i is None:
        ti = n  # fallback: single block if n has no multiple-of-8 divisor
        for cand in (32, 16, 8):
            if n % cand == 0:
                ti = cand
                break
    else:
        ti = block_i
    assert n % ti == 0, "block_i must divide the sequence length"

    # --- tiny O(n*d) glue: folded relative table (never the (n,n,d) slab) ---
    # R[k] = table[clamp(n-1-k, -L, L) + L]; padded to 2n rows so every block
    # window R[ws : ws+n+ti] stays in range (row 2n-1 never reaches the output).
    kidx = jnp.arange(2 * n)
    ridx = jnp.clip(n - 1 - kidx, -max_seq_len, max_seq_len) + max_seq_len
    rtab = rel_pos_emb_table[ridx].astype(q.dtype)        # (2n, d)

    q_r = q.reshape(bh, n, d)                             # free view, no transpose

    isz = int(q.dtype.itemsize)
    vmem_need = (2 * (bh * ti * d + bh * ti * n) * isz    # double-buffered blocks
                 + 2 * n * d * isz                        # resident folded table
                 + bh * ti * (n + ti) * 4)                # f32 intermediate
    vmem_limit = int(min(64 * 1024 * 1024, max(32 * 1024 * 1024, 4 * vmem_need)))

    out = pl.pallas_call(
        partial(_shaw_kernel, scale=scale, ti=ti, n=n),
        out_shape=jax.ShapeDtypeStruct((bh, n, n), q.dtype),
        grid=(n // ti,),
        in_specs=[
            pl.BlockSpec((bh, ti, d), lambda i: (0, i, 0)),   # q block
            pl.BlockSpec((2 * n, d), lambda i: (0, 0)),       # folded table (resident)
        ],
        out_specs=pl.BlockSpec((bh, ti, n), lambda i: (0, i, 0)),
        compiler_params=pltpu.CompilerParams(
            dimension_semantics=("parallel",),
            vmem_limit_bytes=vmem_limit),
        cost_estimate=pl.CostEstimate(
            flops=int(2 * bh * n * (n + ti) * d),
            transcendentals=0,
            bytes_accessed=int((bh * n * d + bh * n * n + 2 * n * d) * isz)),
    )(q_r, rtab)                                          # (bh, n, n)

    return out.reshape(b, h, n, n)                        # free view


def _reference(q, rel_pos_emb_table, max_seq_len):
    b, h, n, d = q.shape
    seq = jnp.arange(n)
    dist = jnp.clip(seq[:, None] - seq[None, :],
                    -max_seq_len, max_seq_len) + max_seq_len
    rel = rel_pos_emb_table[dist].astype(q.dtype)
    return jnp.einsum('bhnd,nrd->bhnr', q, rel,
                      precision=lax.Precision.HIGHEST) * (d ** -0.5)


if __name__ == "__main__":
    # small shapes consistent with the module
    b, h, n, d = 2, 4, 8, 32
    max_seq_len = 8

    key = jax.random.PRNGKey(0)
    kq, kk_, kemb = jax.random.split(key, 3)
    q = jax.random.normal(kq, (b, h, n, d), dtype=jnp.float32)
    k = jax.random.normal(kk_, (b, h, n, d), dtype=jnp.float32)
    # nn.Embedding(2*max_seq_len+1, dim) default init ~ N(0, 1), deterministic here
    rel_pos_emb_table = jax.random.normal(
        kemb, (2 * max_seq_len + 1, d), dtype=jnp.float32)

    pos_attn = shaw_relative_positional_embedding(q, k, rel_pos_emb_table,
                                                  max_seq_len)
    pos_attn = jax.block_until_ready(pos_attn)

    ref = _reference(q, rel_pos_emb_table, max_seq_len)
    assert pos_attn.shape == (b, h, n, n)
    assert jnp.allclose(pos_attn, ref, atol=2e-4, rtol=2e-4), (
        float(jnp.max(jnp.abs(pos_attn - ref))))

    print("KERNEL_OK")
</pallas_src>

<mosaic_0001>
module attributes {stable_mosaic.version = 11 : i64} {
  func.func @_shaw_kernel(%arg0: i32, %arg1: memref<8x8x32xf32, #tpu.memory_space<vmem>>, %arg2: memref<16x32xf32, #tpu.memory_space<vmem>>, %arg3: memref<8x8x8xf32, #tpu.memory_space<vmem>>) attributes {dimension_semantics = [#tpu.dimension_semantics<parallel>], iteration_bounds = array<i64: 1>, scalar_prefetch = 0 : i64, scratch_operands = 0 : i64, tpu.core_type = #tpu.core_type<tc>, window_params = [{transform_indices = @transform_0, window_bounds = array<i64: 8, 8, 32>}, {pipeline_mode = #tpu.pipeline_mode<synchronous>, transform_indices = @transform_1, window_bounds = array<i64: 16, 32>}, {transform_indices = @transform_2, window_bounds = array<i64: 8, 8, 8>}]} {
    %c1_i32 = arith.constant 1 : i32
    %0 = arith.addi %arg0, %c1_i32 : i32
    %c8_i32 = arith.constant 8 : i32
    %1 = arith.muli %c8_i32, %0 : i32
    %c8_i32_0 = arith.constant 8 : i32
    %2 = arith.subi %c8_i32_0, %1 : i32
    %3 = tpu.assume_multiple %2, 8 : i32
    %4 = arith.index_cast %3 : i32 to index
    %c0 = arith.constant 0 : index
    %5 = vector.load %arg2[%4, %c0] : memref<16x32xf32, #tpu.memory_space<vmem>>, vector<16x32xf32>
    %c0_1 = arith.constant 0 : index
    %c0_2 = arith.constant 0 : index
    %c0_3 = arith.constant 0 : index
    %6 = vector.load %arg1[%c0_1, %c0_2, %c0_3] : memref<8x8x32xf32, #tpu.memory_space<vmem>>, vector<8x8x32xf32>
    %7 = vector.shape_cast %6 : vector<8x8x32xf32> to vector<64x32xf32>
    %cst = arith.constant dense<0.000000e+00> : vector<64x16xf32>
    %8 = tpu.matmul %7, %5, %cst {dimension_numbers = #tpu.dot_dimension_numbers<[1], [1], [0], [0], [0, 0, 1, 0], [], []>} : vector<64x32xf32>, vector<16x32xf32>, vector<64x16xf32> -> vector<64x16xf32>
    %9 = vector.shape_cast %8 : vector<64x16xf32> to vector<8x8x16xf32>
    %10 = vector.extract_strided_slice %9 {offsets = [0, 0, 7], sizes = [8, 1, 8], strides = [1, 1, 1]} : vector<8x8x16xf32> to vector<8x1x8xf32>
    %11 = vector.extract_strided_slice %9 {offsets = [0, 1, 6], sizes = [8, 1, 8], strides = [1, 1, 1]} : vector<8x8x16xf32> to vector<8x1x8xf32>
    %12 = vector.extract_strided_slice %9 {offsets = [0, 2, 5], sizes = [8, 1, 8], strides = [1, 1, 1]} : vector<8x8x16xf32> to vector<8x1x8xf32>
    %13 = vector.extract_strided_slice %9 {offsets = [0, 3, 4], sizes = [8, 1, 8], strides = [1, 1, 1]} : vector<8x8x16xf32> to vector<8x1x8xf32>
    %14 = vector.extract_strided_slice %9 {offsets = [0, 4, 3], sizes = [8, 1, 8], strides = [1, 1, 1]} : vector<8x8x16xf32> to vector<8x1x8xf32>
    %15 = vector.extract_strided_slice %9 {offsets = [0, 5, 2], sizes = [8, 1, 8], strides = [1, 1, 1]} : vector<8x8x16xf32> to vector<8x1x8xf32>
    %16 = vector.extract_strided_slice %9 {offsets = [0, 6, 1], sizes = [8, 1, 8], strides = [1, 1, 1]} : vector<8x8x16xf32> to vector<8x1x8xf32>
    %17 = vector.extract_strided_slice %9 {offsets = [0, 7, 0], sizes = [8, 1, 8], strides = [1, 1, 1]} : vector<8x8x16xf32> to vector<8x1x8xf32>
    %18 = tpu.concatenate %10, %11, %12, %13, %14, %15, %16, %17 in 1 : vector<8x1x8xf32>, vector<8x1x8xf32>, vector<8x1x8xf32>, vector<8x1x8xf32>, vector<8x1x8xf32>, vector<8x1x8xf32>, vector<8x1x8xf32>, vector<8x1x8xf32> -> vector<8x8x8xf32>
    %cst_4 = arith.constant 0.176776692 : f32
    %19 = vector.broadcast %cst_4 : f32 to vector<8x8x8xf32>
    %20 = arith.mulf %18, %19 : vector<8x8x8xf32>
    %c0_5 = arith.constant 0 : index
    %c0_6 = arith.constant 0 : index
    %c0_7 = arith.constant 0 : index
    %21 = vector.load %arg3[%c0_5, %c0_6, %c0_7] : memref<8x8x8xf32, #tpu.memory_space<vmem>>, vector<8x8x8xf32>
    tpu.vector_store %arg3[%c0_5, %c0_6, %c0_7], %20 {strides = array<i32>} : memref<8x8x8xf32, #tpu.memory_space<vmem>>, vector<8x8x8xf32>,
    return
  }
  func.func @transform_0(%arg0: i32) -> (i32, i32, i32) {
    %c0_i32 = arith.constant 0 : i32
    %c0_i32_0 = arith.constant 0 : i32
    %c0_i32_1 = arith.constant 0 : i32
    return %c0_i32, %arg0, %c0_i32_0 : i32, i32, i32
  }
  func.func @transform_1(%arg0: i32) -> (i32, i32) {
    %c0_i32 = arith.constant 0 : i32
    %c0_i32_0 = arith.constant 0 : i32
    %c0_i32_1 = arith.constant 0 : i32
    return %c0_i32, %c0_i32_0 : i32, i32
  }
  func.func @transform_2(%arg0: i32) -> (i32, i32, i32) {
    %c0_i32 = arith.constant 0 : i32
    %c0_i32_0 = arith.constant 0 : i32
    %c0_i32_1 = arith.constant 0 : i32
    return %c0_i32, %arg0, %c0_i32_0 : i32, i32, i32
  }
}

</mosaic_0001>

<bundles_post_ra>
// kernel: tpu_custom_call.1
= control target key start
LH: loop header
LB: loop body
LE: loop exit
PB: predicated region body
PF: predicated region fallthrough
CT: control target
= control target key end

     0   :  { %7 = vsyncpa [#allocation3], 0  ;;  %s923_s0 = inlined_call_operand.hbm [shape: f32[8,8,32], index: 0, kind: input, shape index: {}]   ;;  %s924_s1 = inlined_call_operand.hbm [shape: f32[16,32], index: 1, kind: input, shape index: {}]   ;;  %s925_s2 = inlined_call_operand.hbm [shape: f32[8,8,8], index: 2, kind: output, shape index: {}]  }
   0x1   :  { %8 = vsyncpa [#allocation6], 0 }
   0x2   :  { %9 = vsyncpa [#allocation4], 0  ;;  %s626_s9 = smov [#allocation2]   ;;  %s554_s13 = scalar_lea.hbm %s923_s0, 1024 }
   0x3   :  { %s15_s10 = sshll.u32 %s626_s9, 4  ;;  %p555_p0 = scmp.ne.s32.totalorder %s923_s0, %s554_s13  ;;  %s16_s10 = int_to_ptr.vmem [resolvable:$true] %s15_s10 }
   0x4   :  { %p558_p1 = scmp.lt.u32.totalorder %s554_s13, %s923_s0 }
   0x6   :  { %p560_p2 = pnand %p558_p1, %p555_p0 }
   0x8   :  { %563 = shalt.err (!%p560_p2)
}
   0x9   :  { %s564_s18 = scalar_lea.vmem %s16_s10, 1024  ;;  %p569_p4 = scmp.lt.s32.totalorder %s16_s10, %s16_s10 }
   0xa   :  { %p565_p3 = scmp.ne.s32.totalorder %s16_s10, %s564_s18  ;;  %p570_p5 = scmp.lt.s32.totalorder %s564_s18, %s564_s18 }
   0xc   :  { %p571_p6 = por %p570_p5, %p569_p4 }
   0xe   :  { %p572_p7 = pnand %p571_p6, %p565_p3 }
  0x10   :  { %575 = shalt.err (!%p572_p7)
}
  0x11   :  { %s627_s19 = smov 128   ;;  %s628_s20 = smov 8  }
  0x12   :  { %21 = dma.hbm_to_vmem [thread:$0]  %s923_s0, 1024, %s16_s10, [#allocation3], %s627_s19, %s627_s19, %s628_s20  }
  0x13   :  { %s629_s23 = smov [#allocation5]   ;;  %s576_s27 = scalar_lea.hbm %s924_s1, 256 }
  0x14   :  { %s27_s24 = sshll.u32 %s629_s23, 4  ;;  %p577_p8 = scmp.ne.s32.totalorder %s924_s1, %s576_s27  ;;  %s28_s24 = int_to_ptr.vmem [resolvable:$true] %s27_s24 }
  0x15   :  { %p580_p9 = scmp.lt.u32.totalorder %s576_s27, %s924_s1 }
  0x17   :  { %p582_p10 = pnand %p580_p9, %p577_p8 }
  0x19   :  { %585 = shalt.err (!%p582_p10)
}
  0x1a   :  { %s586_s4 = scalar_lea.vmem %s28_s24, 256  ;;  %p591_p12 = scmp.lt.s32.totalorder %s28_s24, %s28_s24 }
  0x1b   :  { %p587_p11 = scmp.ne.s32.totalorder %s28_s24, %s586_s4  ;;  %p592_p13 = scmp.lt.s32.totalorder %s586_s4, %s586_s4 }
  0x1d   :  { %p593_p0 = por %p592_p13, %p591_p12 }
  0x1f   :  { %p594_p1 = pnand %p593_p0, %p587_p11 }
  0x21   :  { %597 = shalt.err (!%p594_p1)
}
  0x22   :  { %33 = dma.hbm_to_vmem [thread:$0]  %s924_s1, 256, %s28_s24, [#allocation6], %s627_s19, %s627_s19, %s628_s20  }
  0x23   :  { %620 = dma.done.wait [#allocation3], 1024  }
  0x24   :  { %621 = vsyncadd [#allocation3], 4294966272 }
  0x25   :  { %622 = dma.done.wait [#allocation6], 256  }
  0x26   :  { %623 = vsyncadd [#allocation6], 4294967040  ;;  %vm54_vm0 = vcmask 261120   ;;  %v44_v0 = vld [vmem:[#allocation5] sm:$0xff]  ;;  %v45_v1 = vld [vmem:[#allocation5 + $0x8] sm:$0xff]  ;;  %s630_s1 = smov 1  }
  0x27   :  { %vm534_vm1 = vmpackc.low %vm54_vm0, %vm54_vm0  ;;  %v46_v2 = vld [vmem:[#allocation2] sm:$0xff]  ;;  %v533_v3 = vpack.c.bf16 %v45_v1, %v44_v0  ;;  %v47_v5 = vld [vmem:[#allocation2 + $0x8] sm:$0xff]  ;;  %s631_s6 = smov 2   ;;  %s632_s7 = smov 3   ;;  %vm366_vm2 = vcmask 1040384   ;;  %vm375_vm3 = vcmask 1041408  }
  0x28   :  { %521 = vmatprep.mubr.msk.f32.mxu0 %vm54_vm0, %v46_v2  ;;  %v50_v4 = vld [vmem:[#allocation2 + $0x20] sm:$0xff]  ;;  %v51_v6 = vld [vmem:[#allocation2 + $0x28] sm:$0xff]  ;;  %v48_v7 = vld [vmem:[#allocation2 + $0x10] sm:$0xff]  ;;  %s633_s8 = smov 4   ;;  %s634_s9 = smov 5   ;;  %vm384_vm4 = vcmask 1042432  }
  0x29   :  { %527 = vmatprep.mubr.msk.f32.mxu1 %vm54_vm0, %v50_v4  ;;  %535 = vmatprep.subr.msk.bf16.mxu0 %vm534_vm1, %v533_v3  ;;  %v52_v8 = vld [vmem:[#allocation2 + $0x30] sm:$0xff]  ;;  %v49_v9 = vld [vmem:[#allocation2 + $0x18] sm:$0xff]  ;;  %s635_s10 = smov 6   ;;  %s636_s11 = smov 7   ;;  %vm393_vm5 = vcmask 1043456   ;;  %vm402_vm6 = vcmask 1044480  }
  0x2a   :  { %539 = vmatprep.subr.msk.bf16.mxu1 %vm534_vm1, %v533_v3  ;;  %538 = vmatpush3.bf16.xpose.msk.msra.mxu0 %vm534_vm1, %v533_v3  ;;  %v53_v10 = vld [vmem:[#allocation2 + $0x38] sm:$0xff]  ;;  %vm411_vm7 = vcmask 1045504   ;;  %vm420_vm8 = vcmask 1046528   ;;  %s637_s12 = smov 121   ;;  %vm469_vm9 = vcmask 64512   ;;  %s638_s13 = smov [#allocation7]  }
  0x2b   :  { %540 = vmatpush3.bf16.xpose.msk.msra.mxu1 %vm534_vm1, %v533_v3  ;;  %s483_s14 = sshll.u32 %s638_s13, 4  ;;  %s484_s14 = int_to_ptr.vmem [resolvable:$true] %s483_s14 }
  0x2c   :  { %s598_s15 = scalar_lea.vmem %s484_s14, 1024  ;;  %p603_p3 = scmp.lt.s32.totalorder %s484_s14, %s484_s14 }
  0x2d   :  { %p599_p2 = scmp.ne.s32.totalorder %s484_s14, %s598_s15  ;;  %p604_p4 = scmp.lt.s32.totalorder %s598_s15, %s598_s15 }
  0x2f   :  { %p605_p5 = por %p604_p4, %p603_p3 }
  0x31   :  { %522 = vmatmul.mubr.msk.f32.vlgmr.msra.gmra.mrb[0].mxu0 %vm54_vm0, %v47_v5  ;;  %p606_p6 = pnand %p605_p5, %p599_p2 }
  0x32   :  { %528 = vmatmul.mubr.msk.f32.vlgmr.msra.gmra.mrb[0].mxu1 %vm54_vm0, %v51_v6  ;;  %524 = vmatprep.mubr.msk.f32.mxu0 %vm54_vm0, %v48_v7 }
  0x33   :  { %530 = vmatprep.mubr.msk.f32.mxu1 %vm54_vm0, %v52_v8 }
  0x35   :  { %525 = vmatmul.mubr.msk.f32.gmra.mrb[2].mxu0 %vm54_vm0, %v49_v9 }
  0x36   :  { %531 = vmatmul.mubr.msk.f32.gmra.mrb[2].mxu1 %vm54_vm0, %v53_v10 }
 0x104   :  { %v694_v11 = vpop.f32.mrb[0].mxu0 }
 0x105   :  { %v696_v12 = vpop.f32.mrb[0].mxu1  ;;  %200 = vrot.lane.b32.xlu0 %v694_v11, %s630_s1  ;;  %v704_v14 = vpop.f32.mrb[1].mxu0 }
 0x106   :  { %208 = vrot.lane.b32.xlu1 %v696_v12, %s630_s1  ;;  %v700_v13 = vpop.f32.mrb[1].mxu1 }
 0x108   :  { %v706_v15 = vpop.f32.mrb[2].mxu0 }
 0x109   :  { %v708_v16 = vpop.f32.mrb[2].mxu1  ;;  %198 = vrot.lane.b32.xlu0 %v704_v14, %s630_s1  ;;  %v714_v17 = vpop.f32.mrb[3].mxu0 }
 0x10a   :  { %224 = vrot.lane.b32.xlu1 %v694_v11, %s631_s6  ;;  %v716_v18 = vpop.f32.mrb[3].mxu1 }
 0x10d   :  { %206 = vrot.lane.b32.xlu0 %v700_v13, %s630_s1 }
 0x10e   :  { %232 = vrot.lane.b32.xlu1 %v696_v12, %s631_s6 }
 0x111   :  { %222 = vrot.lane.b32.xlu0 %v704_v14, %s631_s6 }
 0x112   :  { %248 = vrot.lane.b32.xlu1 %v694_v11, %s632_s7 }
 0x115   :  { %230 = vrot.lane.b32.xlu0 %v700_v13, %s631_s6 }
 0x116   :  { %256 = vrot.lane.b32.xlu1 %v696_v12, %s632_s7 }
 0x119   :  { %246 = vrot.lane.b32.xlu0 %v704_v14, %s632_s7 }
 0x11a   :  { %272 = vrot.lane.b32.xlu1 %v694_v11, %s633_s8 }
 0x11d   :  { %254 = vrot.lane.b32.xlu0 %v700_v13, %s632_s7 }
 0x11e   :  { %280 = vrot.lane.b32.xlu1 %v696_v12, %s633_s8 }
 0x121   :  { %270 = vrot.lane.b32.xlu0 %v704_v14, %s633_s8 }
 0x122   :  { %296 = vrot.lane.b32.xlu1 %v694_v11, %s634_s9 }
 0x125   :  { %278 = vrot.lane.b32.xlu0 %v700_v13, %s633_s8 }
 0x126   :  { %304 = vrot.lane.b32.xlu1 %v696_v12, %s634_s9 }
 0x129   :  { %294 = vrot.lane.b32.xlu0 %v704_v14, %s634_s9 }
 0x12a   :  { %320 = vrot.lane.b32.xlu1 %v694_v11, %s635_s10 }
 0x12d   :  { %302 = vrot.lane.b32.xlu0 %v700_v13, %s634_s9 }
 0x12e   :  { %328 = vrot.lane.b32.xlu1 %v696_v12, %s635_s10 }
 0x131   :  { %318 = vrot.lane.b32.xlu0 %v704_v14, %s635_s10 }
 0x132   :  { %344 = vrot.lane.b32.xlu1 %v694_v11, %s636_s11 }
 0x135   :  { %326 = vrot.lane.b32.xlu0 %v700_v13, %s635_s10 }
 0x136   :  { %204 = vrot.lane.b32.xlu1 %v706_v15, %s630_s1 }
 0x139   :  { %342 = vrot.lane.b32.xlu0 %v704_v14, %s636_s11 }
 0x13a   :  { %212 = vrot.lane.b32.xlu1 %v708_v16, %s630_s1 }
 0x13d   :  { %350 = vrot.lane.b32.xlu0 %v700_v13, %s636_s11 }
 0x13e   :  { %228 = vrot.lane.b32.xlu1 %v706_v15, %s631_s6 }
 0x141   :  { %210 = vrot.lane.b32.xlu0 %v716_v18, %s630_s1 }
 0x142   :  { %236 = vrot.lane.b32.xlu1 %v708_v16, %s631_s6 }
 0x145   :  { %226 = vrot.lane.b32.xlu0 %v714_v17, %s631_s6 }
 0x146   :  { %252 = vrot.lane.b32.xlu1 %v706_v15, %s632_s7 }
 0x149   :  { %234 = vrot.lane.b32.xlu0 %v716_v18, %s631_s6 }
 0x14a   :  { %260 = vrot.lane.b32.xlu1 %v708_v16, %s632_s7 }
 0x14d   :  { %250 = vrot.lane.b32.xlu0 %v714_v17, %s632_s7 }
 0x14e   :  { %276 = vrot.lane.b32.xlu1 %v706_v15, %s633_s8 }
 0x151   :  { %258 = vrot.lane.b32.xlu0 %v716_v18, %s632_s7 }
 0x152   :  { %284 = vrot.lane.b32.xlu1 %v708_v16, %s633_s8 }
 0x155   :  { %274 = vrot.lane.b32.xlu0 %v714_v17, %s633_s8 }
 0x156   :  { %300 = vrot.lane.b32.xlu1 %v706_v15, %s634_s9 }
 0x159   :  { %282 = vrot.lane.b32.xlu0 %v716_v18, %s633_s8 }
 0x15a   :  { %308 = vrot.lane.b32.xlu1 %v708_v16, %s634_s9 }
 0x15d   :  { %298 = vrot.lane.b32.xlu0 %v714_v17, %s634_s9 }
 0x15e   :  { %324 = vrot.lane.b32.xlu1 %v706_v15, %s635_s10 }
 0x161   :  { %306 = vrot.lane.b32.xlu0 %v716_v18, %s634_s9 }
 0x162   :  { %332 = vrot.lane.b32.xlu1 %v708_v16, %s635_s10 }
 0x165   :  { %322 = vrot.lane.b32.xlu0 %v714_v17, %s635_s10 }
 0x166   :  { %348 = vrot.lane.b32.xlu1 %v706_v15, %s636_s11 }
 0x169   :  { %330 = vrot.lane.b32.xlu0 %v716_v18, %s635_s10 }
 0x16a   :  { %202 = vrot.lane.b32.xlu1 %v714_v17, %s630_s1 }
 0x16d   :  { %346 = vrot.lane.b32.xlu0 %v714_v17, %s636_s11 }
 0x16e   :  { %352 = vrot.lane.b32.xlu1 %v696_v12, %s636_s11 }
 0x171   :  { %354 = vrot.lane.b32.xlu0 %v716_v18, %s636_s11 }
 0x172   :  { %356 = vrot.lane.b32.xlu1 %v708_v16, %s636_s11 }
 0x177   :  { %v201_v20 = vpop.permute.xlu0 %200 }
 0x178   :  { %v209_v19 = vpop.permute.xlu1 %208  ;;  %v368_v44 = vsel %vm366_vm2, %v694_v11, %v201_v20 }
 0x179   :  { %v372_v21 = vsel %vm366_vm2, %v696_v12, %v209_v19 }
 0x17b   :  { %v199_v23 = vpop.permute.xlu0 %198 }
 0x17c   :  { %v225_v22 = vpop.permute.xlu1 %224  ;;  %v367_v56 = vsel %vm366_vm2, %v704_v14, %v199_v23 }
 0x17d   :  { %v377_v45 = vsel %vm375_vm3, %v368_v44, %v225_v22 }
 0x17f   :  { %v207_v25 = vpop.permute.xlu0 %206 }
 0x180   :  { %v233_v24 = vpop.permute.xlu1 %232  ;;  %v371_v62 = vsel %vm366_vm2, %v700_v13, %v207_v25 }
 0x181   :  { %v381_v26 = vsel %vm375_vm3, %v372_v21, %v233_v24 }
 0x183   :  { %v223_v28 = vpop.permute.xlu0 %222 }
 0x184   :  { %v249_v27 = vpop.permute.xlu1 %248  ;;  %v376_v57 = vsel %vm375_vm3, %v367_v56, %v223_v28 }
 0x185   :  { %v386_v48 = vsel %vm384_vm4, %v377_v45, %v249_v27 }
 0x187   :  { %v231_v30 = vpop.permute.xlu0 %230 }
 0x188   :  { %v257_v29 = vpop.permute.xlu1 %256  ;;  %v380_v0 = vsel %vm375_vm3, %v371_v62, %v231_v30 }
 0x189   :  { %v390_v31 = vsel %vm384_vm4, %v381_v26, %v257_v29 }
 0x18b   :  { %v247_v33 = vpop.permute.xlu0 %246 }
 0x18c   :  { %v273_v32 = vpop.permute.xlu1 %272  ;;  %v385_v60 = vsel %vm384_vm4, %v376_v57, %v247_v33 }
 0x18d   :  { %v395_v49 = vsel %vm393_vm5, %v386_v48, %v273_v32 }
 0x18f   :  { %v255_v35 = vpop.permute.xlu0 %254 }
 0x190   :  { %v281_v34 = vpop.permute.xlu1 %280  ;;  %v389_v4 = vsel %vm384_vm4, %v380_v0, %v255_v35 }
 0x191   :  { %v399_v36 = vsel %vm393_vm5, %v390_v31, %v281_v34 }
 0x193   :  { %v271_v38 = vpop.permute.xlu0 %270 }
 0x194   :  { %v297_v37 = vpop.permute.xlu1 %296  ;;  %v394_v61 = vsel %vm393_vm5, %v385_v60, %v271_v38 }
 0x195   :  { %v404_v50 = vsel %vm402_vm6, %v395_v49, %v297_v37 }
 0x197   :  { %v279_v40 = vpop.permute.xlu0 %278 }
 0x198   :  { %v305_v39 = vpop.permute.xlu1 %304  ;;  %v398_v6 = vsel %vm393_vm5, %v389_v4, %v279_v40 }
 0x199   :  { %v828_v41 = vsel %vm402_vm6, %v399_v36, %v305_v39 }
 0x19b   :  { %v295_v43 = vpop.permute.xlu0 %294 }
 0x19c   :  { %v321_v42 = vpop.permute.xlu1 %320  ;;  %v403_v63 = vsel %vm402_vm6, %v394_v61, %v295_v43 }
 0x19d   :  { %v413_v51 = vsel %vm411_vm7, %v404_v50, %v321_v42 }
 0x19f   :  { %v303_v47 = vpop.permute.xlu0 %302 }
 0x1a0   :  { %v833_v46 = vpop.permute.xlu1 %328  ;;  %v407_v8 = vsel %vm402_vm6, %v398_v6, %v303_v47 }
 0x1a3   :  { %v319_v53 = vpop.permute.xlu0 %318 }
 0x1a4   :  { %v345_v52 = vpop.permute.xlu1 %344  ;;  %v412_v1 = vsel %vm411_vm7, %v403_v63, %v319_v53  ;;  %v417_v53 = vsel %vm411_vm7, %v828_v41, %v833_v46 }
 0x1a5   :  { %v422_v54 = vsel %vm420_vm8, %v413_v51, %v345_v52 }
 0x1a6   :  { %v430_v55 = vmul.f32 0.17677669, %v422_v54 }
 0x1a7   :  { %v327_v58 = vpop.permute.xlu0 %326 }
 0x1a8   :  { %v205_v59 = vpop.permute.xlu1 %204  ;;  %447 = vrot.lane.b32.xlu1 %v430_v55, %s637_s12  ;;  %v416_v9 = vsel %vm411_vm7, %v407_v8, %v327_v58 }
 0x1a9   :  { %v370_v34 = vsel %vm366_vm2, %v706_v15, %v205_v59 }
 0x1ab   :  { %v343_v2 = vpop.permute.xlu0 %342 }
 0x1ac   :  { %v213_v3 = vpop.permute.xlu1 %212  ;;  %v421_v5 = vsel %vm420_vm8, %v412_v1, %v343_v2 }
 0x1ad   :  { %v429_v7 = vmul.f32 0.17677669, %v421_v5  ;;  %v374_v50 = vsel %vm366_vm2, %v708_v16, %v213_v3 }
 0x1af   :  { %v351_v10 = vpop.permute.xlu0 %350  ;;  %445 = vrot.lane.b32.xlu0 %v429_v7, %s637_s12 }
 0x1b0   :  { %v229_v11 = vpop.permute.xlu1 %228  ;;  %v425_v12 = vsel %vm420_vm8, %v416_v9, %v351_v10 }
 0x1b1   :  { %v433_v13 = vmul.f32 0.17677669, %v425_v12  ;;  %v379_v35 = vsel %vm375_vm3, %v370_v34, %v229_v11 }
 0x1b3   :  { %v211_v14 = vpop.permute.xlu0 %210  ;;  %453 = vrot.lane.b32.xlu0 %v433_v13, %s637_s12 }
 0x1b4   :  { %v237_v19 = vpop.permute.xlu1 %236  ;;  %v373_v51 = vsel %vm366_vm2, %v716_v18, %v211_v14 }
 0x1b5   :  { %v383_v54 = vsel %vm375_vm3, %v374_v50, %v237_v19 }
 0x1b7   :  { %v227_v21 = vpop.permute.xlu0 %226 }
 0x1b8   :  { %v253_v20 = vpop.permute.xlu1 %252 }
 0x1b9   :  { %v388_v38 = vsel %vm384_vm4, %v379_v35, %v253_v20 }
 0x1bb   :  { %v235_v23 = vpop.permute.xlu0 %234 }
 0x1bc   :  { %v261_v22 = vpop.permute.xlu1 %260  ;;  %v382_v55 = vsel %vm375_vm3, %v373_v51, %v235_v23 }
 0x1bd   :  { %v392_v58 = vsel %vm384_vm4, %v383_v54, %v261_v22 }
 0x1bf   :  { %v251_v25 = vpop.permute.xlu0 %250 }
 0x1c0   :  { %v277_v24 = vpop.permute.xlu1 %276 }
 0x1c1   :  { %v397_v39 = vsel %vm393_vm5, %v388_v38, %v277_v24 }
 0x1c3   :  { %v259_v27 = vpop.permute.xlu0 %258 }
 0x1c4   :  { %v285_v26 = vpop.permute.xlu1 %284  ;;  %v391_v16 = vsel %vm384_vm4, %v382_v55, %v259_v27 }
 0x1c5   :  { %v401_v60 = vsel %vm393_vm5, %v392_v58, %v285_v26 }
 0x1c7   :  { %v275_v29 = vpop.permute.xlu0 %274 }
 0x1c8   :  { %v301_v28 = vpop.permute.xlu1 %300 }
 0x1c9   :  { %v406_v40 = vsel %vm402_vm6, %v397_v39, %v301_v28 }
 0x1cb   :  { %v283_v31 = vpop.permute.xlu0 %282 }
 0x1cc   :  { %v309_v30 = vpop.permute.xlu1 %308  ;;  %v400_v41 = vsel %vm393_vm5, %v391_v16, %v283_v31 }
 0x1cd   :  { %v410_v62 = vsel %vm402_vm6, %v401_v60, %v309_v30 }
 0x1cf   :  { %v299_v33 = vpop.permute.xlu0 %298 }
 0x1d0   :  { %v325_v32 = vpop.permute.xlu1 %324 }
 0x1d1   :  { %v415_v42 = vsel %vm411_vm7, %v406_v40, %v325_v32 }
 0x1d3   :  { %v307_v37 = vpop.permute.xlu0 %306 }
 0x1d4   :  { %v333_v36 = vpop.permute.xlu1 %332  ;;  %v409_v63 = vsel %vm402_vm6, %v400_v41, %v307_v37 }
 0x1d5   :  { %v419_v1 = vsel %vm411_vm7, %v410_v62, %v333_v36 }
 0x1d7   :  { %v323_v44 = vpop.permute.xlu0 %322 }
 0x1d8   :  { %v349_v43 = vpop.permute.xlu1 %348 }
 0x1d9   :  { %v424_v45 = vsel %vm420_vm8, %v415_v42, %v349_v43 }
 0x1da   :  { %v432_v8 = vmul.f32 0.17677669, %v424_v45 }
 0x1db   :  { %v331_v47 = vpop.permute.xlu0 %330 }
 0x1dc   :  { %v203_v48 = vpop.permute.xlu1 %202  ;;  %v418_v2 = vsel %vm411_vm7, %v409_v63, %v331_v47 }
 0x1dd   :  { %v369_v15 = vsel %vm366_vm2, %v714_v17, %v203_v48 }
 0x1de   :  { %v378_v49 = vsel %vm375_vm3, %v369_v15, %v227_v21 }
 0x1df   :  { %v387_v52 = vsel %vm384_vm4, %v378_v49, %v251_v25  ;;  %v347_v56 = vpop.permute.xlu0 %346 }
 0x1e0   :  { %v396_v17 = vsel %vm393_vm5, %v387_v52, %v275_v29  ;;  %v353_v57 = vpop.permute.xlu1 %352 }
 0x1e1   :  { %v405_v18 = vsel %vm402_vm6, %v396_v17, %v299_v33  ;;  %v426_v59 = vsel %vm420_vm8, %v417_v53, %v353_v57 }
 0x1e2   :  { %v414_v46 = vsel %vm411_vm7, %v405_v18, %v323_v44  ;;  %v434_v61 = vmul.f32 0.17677669, %v426_v59 }
 0x1e3   :  { %v423_v0 = vsel %vm420_vm8, %v414_v46, %v347_v56  ;;  %v355_v4 = vpop.permute.xlu0 %354 }
 0x1e4   :  { %v431_v3 = vmul.f32 0.17677669, %v423_v0  ;;  %455 = vrot.lane.b32.xlu1 %v434_v61, %s637_s12  ;;  %v357_v5 = vpop.permute.xlu1 %356  ;;  %v427_v6 = vsel %vm420_vm8, %v418_v2, %v355_v4 }
 0x1e5   :  { %v428_v7 = vsel %vm420_vm8, %v419_v1, %v357_v5  ;;  %v435_v9 = vmul.f32 0.17677669, %v427_v6 }
 0x1e6   :  { %449 = vrot.lane.b32.xlu0 %v431_v3, %s637_s12  ;;  %v436_v10 = vmul.f32 0.17677669, %v428_v7 }
 0x1e8   :  { %451 = vrot.lane.b32.xlu1 %v432_v8, %s637_s12 }
 0x1ea   :  { %457 = vrot.lane.b32.xlu0 %v435_v9, %s637_s12 }
 0x1ec   :  { %459 = vrot.lane.b32.xlu1 %v436_v10, %s637_s12 }
 0x21a   :  { %v448_v11 = vpop.permute.xlu1 %447 }
 0x21b   :  { %471 = vst.msk [vmem:[#allocation7 + $0x8] sm:$0xff] %vm469_vm9, %v448_v11 }
 0x221   :  { %v446_v12 = vpop.permute.xlu0 %445 }
 0x222   :  { %470 = vst.msk [vmem:[#allocation7] sm:$0xff] %vm469_vm9, %v446_v12 }
 0x225   :  { %v454_v13 = vpop.permute.xlu0 %453 }
 0x226   :  { %474 = vst.msk [vmem:[#allocation7 + $0x20] sm:$0xff] %vm469_vm9, %v454_v13 }
 0x256   :  { %v456_v14 = vpop.permute.xlu1 %455 }
 0x257   :  { %475 = vst.msk [vmem:[#allocation7 + $0x28] sm:$0xff] %vm469_vm9, %v456_v14 }
 0x258   :  { %v450_v19 = vpop.permute.xlu0 %449 }
 0x259   :  { %472 = vst.msk [vmem:[#allocation7 + $0x10] sm:$0xff] %vm469_vm9, %v450_v19 }
 0x25a   :  { %v452_v20 = vpop.permute.xlu1 %451 }
 0x25b   :  { %473 = vst.msk [vmem:[#allocation7 + $0x18] sm:$0xff] %vm469_vm9, %v452_v20 }
 0x25c   :  { %v458_v21 = vpop.permute.xlu0 %457 }
 0x25d   :  { %476 = vst.msk [vmem:[#allocation7 + $0x30] sm:$0xff] %vm469_vm9, %v458_v21 }
 0x25e   :  { %v460_v22 = vpop.permute.xlu1 %459 }
 0x25f   :  { %477 = vst.msk [vmem:[#allocation7 + $0x38] sm:$0xff] %vm469_vm9, %v460_v22 }
 0x260   :  { %609 = shalt.err (!%p606_p6)
}
 0x261   :  { %s610_s18 = scalar_lea.hbm %s925_s2, 1024 }
 0x262   :  { %p611_p7 = scmp.ne.s32.totalorder %s925_s2, %s610_s18  ;;  %p614_p8 = scmp.lt.u32.totalorder %s610_s18, %s925_s2 }
 0x264   :  { %p616_p9 = pnand %p614_p8, %p611_p7 }
 0x266   :  { %619 = shalt.err (!%p616_p9)
}
 0x267   :  { %489 = dma.vmem_to_hbm [thread:$0]  %s484_s14, 1024, %s925_s2, [#allocation4], %s627_s19, %s627_s19, %s628_s20  }
 0x268   :  { %624 = dma.done.wait [#allocation4], 1024  }
 0x269   :  { %625 = vsyncadd [#allocation4], 4294966272 }
 0x26a   :  { %493 = vsyncpa [#allocation3], 1 }
 0x26b   :  { %494 = vsyncpa [#allocation6], 1 }
 0x26c   :  { %495 = vsyncpa [#allocation4], 1 }

</bundles_post_ra>
